<compile_context>
chip_gen: v5e
topology: v5e:2x2
jax: 0.10.0
libtpu: 0.0.40
codegen_flags: <defaults>
</compile_context>

<pallas_src>
import jax
import jax.numpy as jnp
from jax.experimental import pallas as pl
from jax.experimental.pallas import tpu as pltpu


_LANE = 128                       # TPU lane width (last dim of a vreg)
_MAX_TN = 2048                    # cap on lane-dim tile width (multiple of 128)
_TARGET_PAIR_BYTES = 8 << 20      # ~8 MiB per (input tile + output tile) pair
_VMEM_LIMIT_BYTES = 32 << 20      # safe scoped-VMEM budget on v5e / v6e / v7x


def _round_up(a, b):
    return -(-a // b) * b


def _sublane(dtype):
    # Sublane packing per vreg: f32 -> 8, bf16/f16 -> 16, int8/fp8 -> 32.
    return max(8, 32 // jnp.dtype(dtype).itemsize)


def _pick_tn(total, sublane):
    """Largest multiple of 128 (<= _MAX_TN) that divides `total`.
    Prefer one that leaves >= `sublane` rows; None if no such divisor exists."""
    cands = [d for d in range(_LANE, _MAX_TN + 1, _LANE) if total % d == 0]
    if not cands:
        return None
    deep = [d for d in cands if total // d >= sublane]
    return max(deep) if deep else max(cands)


def _pick_tm(rows, sublane, budget_rows):
    """Row-tile height: largest sublane-multiple divisor of `rows` within the
    VMEM byte budget, aiming for >= 2 grid steps (keeps both v7x TCs busy)."""
    cap = min(budget_rows, max(sublane, _round_up(-(-rows // 2), sublane)))
    cands = [d for d in range(sublane, cap + 1, sublane) if rows % d == 0]
    if cands:
        return max(cands)
    if rows <= budget_rows:
        return rows  # full-dim block is always layout-legal, still fits budget
    return None      # caller falls back to the padding path


def _make_lambda_kernel(fn, arg, kw):
    """Pallas kernel body: whole-tile load -> user callable -> whole-tile store."""

    def kernel(x_ref, o_ref):
        o_ref[...] = fn(x_ref[...], *arg, **kw).astype(o_ref.dtype)

    return kernel


class PallasLambda:
    """Pallas equivalent of the PyTorch `Lambda` module.

    - fn : a JAX-traceable, elementwise (shape-preserving per tile) callable
    - *arg / **kw : extra arguments.  Only scalars / small constants are safe;
      large arrays would be baked into the kernel as VMEM constants.
    """

    def __init__(self, fn, *arg, **kw):
        self.fn = fn
        self.arg = arg
        self.kw = kw

    def __call__(self, x):
        orig_shape = x.shape
        total = int(x.size)
        if total == 0:  # degenerate: nothing to tile
            return self.fn(x, *self.arg, **self.kw)

        # Output dtype / shape-preserving check (fn must be elementwise).
        out_abs = jax.eval_shape(lambda a: self.fn(a, *self.arg, **self.kw), x)
        assert out_abs.shape == orig_shape, (
            "PallasLambda only supports shape-preserving (elementwise) fn"
        )
        out_dtype = out_abs.dtype

        in_bytes = jnp.dtype(x.dtype).itemsize
        out_bytes = jnp.dtype(out_dtype).itemsize
        pair_bytes = in_bytes + out_bytes
        sub = max(_sublane(x.dtype), _sublane(out_dtype))

        flat = x.reshape(-1)

        # ---- choose a lane-dense 2D slab (rows, tn) with tn % 128 == 0 ------
        tn = _pick_tn(total, sub)
        tm = None
        if tn is not None:
            rows = total // tn
            budget_rows = max(
                sub, (_TARGET_PAIR_BYTES // (tn * pair_bytes)) // sub * sub
            )
            tm = _pick_tm(rows, sub, budget_rows)

        if tn is not None and tm is not None:
            rows_total = total // tn
            padded = False
        else:
            # Fallback: pad the flat array so it tiles exactly (elementwise fn
            # on the zero padding is discarded afterwards).
            tn = _MAX_TN
            while tn > _LANE and tn * sub > 2 * total:
                tn //= 2  # stays a multiple of 128
            budget_rows = max(
                sub, (_TARGET_PAIR_BYTES // (tn * pair_bytes)) // sub * sub
            )
            rows_needed = -(-total // tn)
            rows_aligned = _round_up(rows_needed, sub)
            if rows_aligned <= budget_rows:
                tm = rows_aligned
                rows_total = rows_aligned
            else:
                tm = budget_rows
                rows_total = _round_up(rows_needed, tm)
            flat = jnp.pad(flat, (0, rows_total * tn - total))
            padded = True

        x2d = flat.reshape(rows_total, tn)
        grid = (rows_total // tm,)

        kernel = _make_lambda_kernel(self.fn, self.arg, self.kw)

        out2d = pl.pallas_call(
            kernel,
            out_shape=jax.ShapeDtypeStruct((rows_total, tn), out_dtype),
            grid_spec=pltpu.PrefetchScalarGridSpec(
                num_scalar_prefetch=0,
                grid=grid,
                in_specs=[pl.BlockSpec((tm, tn), lambda i: (i, 0))],
                out_specs=pl.BlockSpec((tm, tn), lambda i: (i, 0)),
            ),
            compiler_params=pltpu.CompilerParams(
                dimension_semantics=("parallel",),
                vmem_limit_bytes=_VMEM_LIMIT_BYTES,
            ),
        )(x2d)

        out_flat = out2d.reshape(-1)
        if padded:
            out_flat = out_flat[:total]
        return out_flat.reshape(orig_shape)


if __name__ == "__main__":
    # Deterministic example: Lambda(fn, scale, shift=...) with an elementwise
    # callable — mirrors typical usage of the PyTorch Lambda module.
    def fn(x, scale, shift=0.0):
        return jax.nn.gelu(x * scale) + shift

    scale = 1.5
    shift = 0.25

    key = jax.random.PRNGKey(0)

    # Nicely-divisible NCHW input (no padding path, lane-dense tn).
    x = jax.random.normal(key, (2, 4, 16, 16), dtype=jnp.float32)
    module = PallasLambda(fn, scale, shift=shift)
    out = jax.block_until_ready(module(x))
    ref = fn(x, scale, shift=shift)
    assert out.shape == x.shape
    assert jnp.allclose(out, ref, atol=1e-5, rtol=1e-5)

    # Non-128-divisible spatial dims (7x7) exercise the padded fallback path.
    x2 = jax.random.normal(jax.random.PRNGKey(1), (2, 4, 7, 7), dtype=jnp.float32)
    out2 = jax.block_until_ready(module(x2))
    ref2 = fn(x2, scale, shift=shift)
    assert out2.shape == x2.shape
    assert jnp.allclose(out2, ref2, atol=1e-5, rtol=1e-5)

    print("KERNEL_OK")
</pallas_src>

<mosaic_0001>
module attributes {stable_mosaic.version = 11 : i64} {
  func.func @kernel(%arg0: i32, %arg1: memref<8x256xf32, #tpu.memory_space<vmem>>, %arg2: memref<8x256xf32, #tpu.memory_space<vmem>>) attributes {dimension_semantics = [#tpu.dimension_semantics<parallel>], iteration_bounds = array<i64: 1>, scalar_prefetch = 0 : i64, scratch_operands = 0 : i64, tpu.core_type = #tpu.core_type<tc>, window_params = [{transform_indices = @transform_0, window_bounds = array<i64: 8, 256>}, {transform_indices = @transform_1, window_bounds = array<i64: 8, 256>}]} {
    %c0 = arith.constant 0 : index
    %c0_0 = arith.constant 0 : index
    %0 = vector.load %arg1[%c0, %c0_0] : memref<8x256xf32, #tpu.memory_space<vmem>>, vector<8x256xf32>
    %cst = arith.constant 1.500000e+00 : f32
    %1 = vector.broadcast %cst : f32 to vector<8x256xf32>
    %2 = arith.mulf %0, %1 : vector<8x256xf32>
    %3 = arith.mulf %2, %2 : vector<8x256xf32>
    %4 = arith.mulf %2, %3 : vector<8x256xf32>
    %cst_1 = arith.constant 4.471500e-02 : f32
    %5 = vector.broadcast %cst_1 : f32 to vector<8x256xf32>
    %6 = arith.mulf %5, %4 : vector<8x256xf32>
    %7 = arith.addf %2, %6 : vector<8x256xf32>
    %cst_2 = arith.constant 0.797884583 : f32
    %8 = vector.broadcast %cst_2 : f32 to vector<8x256xf32>
    %9 = arith.mulf %8, %7 : vector<8x256xf32>
    %10 = math.tanh %9 : vector<8x256xf32>
    %cst_3 = arith.constant 1.000000e+00 : f32
    %11 = vector.broadcast %cst_3 : f32 to vector<8x256xf32>
    %12 = arith.addf %11, %10 : vector<8x256xf32>
    %cst_4 = arith.constant 5.000000e-01 : f32
    %13 = vector.broadcast %cst_4 : f32 to vector<8x256xf32>
    %14 = arith.mulf %13, %12 : vector<8x256xf32>
    %15 = arith.mulf %2, %14 : vector<8x256xf32>
    %cst_5 = arith.constant 2.500000e-01 : f32
    %16 = vector.broadcast %cst_5 : f32 to vector<8x256xf32>
    %17 = arith.addf %15, %16 : vector<8x256xf32>
    %c0_6 = arith.constant 0 : index
    %c0_7 = arith.constant 0 : index
    %18 = vector.load %arg2[%c0_6, %c0_7] : memref<8x256xf32, #tpu.memory_space<vmem>>, vector<8x256xf32>
    tpu.vector_store %arg2[%c0_6, %c0_7], %17 {strides = array<i32>} : memref<8x256xf32, #tpu.memory_space<vmem>>, vector<8x256xf32>,
    return
  }
  func.func @transform_0(%arg0: i32) -> (i32, i32) {
    %c0_i32 = arith.constant 0 : i32
    %c0_i32_0 = arith.constant 0 : i32
    return %arg0, %c0_i32 : i32, i32
  }
  func.func @transform_1(%arg0: i32) -> (i32, i32) {
    %c0_i32 = arith.constant 0 : i32
    %c0_i32_0 = arith.constant 0 : i32
    return %arg0, %c0_i32 : i32, i32
  }
}

</mosaic_0001>

<bundles_post_ra>
// kernel: tpu_custom_call.1
= control target key start
LH: loop header
LB: loop body
LE: loop exit
PB: predicated region body
PF: predicated region fallthrough
CT: control target
= control target key end

     0   :  { %6 = vsyncpa [#allocation3], 0  ;;  %s142_s0 = inlined_call_operand.hbm [shape: f32[8,256], index: 0, kind: input, shape index: {}]   ;;  %s143_s1 = inlined_call_operand.hbm [shape: f32[8,256], index: 1, kind: output, shape index: {}]  }
   0x1   :  { %7 = vsyncpa [#allocation4], 0  ;;  %s13_s8 = sshll.u32 %s142_s0, 4  ;;  %s124_s9 = smov [#allocation2]   ;;  %s14_s8 = int_to_ptr.hbm [resolvable:$true] %s13_s8 }
   0x2   :  { %s15_s10 = sshll.u32 %s124_s9, 4  ;;  %s16_s10 = int_to_ptr.vmem [resolvable:$true] %s15_s10 }
   0x3   :  { %18 = dma.hbm_to_vmem [thread:$0]  %s14_s8, 256, %s16_s10, [#allocation3]  }
   0x4   :  { %120 = dma.done.wait [#allocation3], 256  }
   0x5   :  { %121 = vsyncadd [#allocation3], 4294967040  ;;  %v23_v0 = vld [vmem:[#allocation2] sm:$0xff]  ;;  %v24_v1 = vld [vmem:[#allocation2 + $0x8] sm:$0xff]  ;;  %s125_s0 = smov [#allocation5]   ;;  %s56_s14 = sshll.u32 %s143_s1, 4  ;;  %s57_s14 = int_to_ptr.hbm [resolvable:$true] %s56_s14 }
   0x6   :  { %v25_v2 = vmul.f32 1.5, %v23_v0  ;;  %v26_v3 = vmul.f32 1.5, %v24_v1  ;;  %s54_s11 = sshll.u32 %s125_s0, 4  ;;  %s55_s11 = int_to_ptr.vmem [resolvable:$true] %s54_s11 }
   0x8   :  { %v27_v4 = vmul.f32 %v25_v2, %v25_v2  ;;  %v28_v5 = vmul.f32 %v26_v3, %v26_v3 }
   0xa   :  { %v29_v6 = vmul.f32 %v27_v4, %v25_v2  ;;  %v30_v7 = vmul.f32 %v28_v5, %v26_v3 }
   0xc   :  { %v31_v8 = vmul.f32 0.044715, %v29_v6  ;;  %v32_v9 = vmul.f32 0.044715, %v30_v7 }
   0xe   :  { %v33_v10 = vadd.f32 %v31_v8, %v25_v2  ;;  %v34_v11 = vadd.f32 %v32_v9, %v26_v3 }
  0x10   :  { %v35_v12 = vmul.f32 0.7978846, %v33_v10  ;;  %v36_v13 = vmul.f32 0.7978846, %v34_v11 }
  0x12   :  { %68 = vtanh.f32 %v35_v12 }
  0x13   :  { %70 = vtanh.f32 %v36_v13 }
  0x18   :  { %v69_v14 = vpop.eup %68 }
  0x19   :  { %v71_v15 = vpop.eup %70  ;;  %v39_v16 = vadd.f32 1.0, %v69_v14 }
  0x1a   :  { %v40_v17 = vadd.f32 1.0, %v71_v15 }
  0x1b   :  { %v41_v18 = vmul.f32 0.5, %v39_v16 }
  0x1c   :  { %v42_v19 = vmul.f32 0.5, %v40_v17 }
  0x1d   :  { %v43_v20 = vmul.f32 %v41_v18, %v25_v2 }
  0x1e   :  { %v44_v21 = vmul.f32 %v42_v19, %v26_v3 }
  0x1f   :  { %v45_v22 = vadd.f32 0.25, %v43_v20 }
  0x20   :  { %v46_v23 = vadd.f32 0.25, %v44_v21 }
  0x21   :  { %47 = vst [vmem:[#allocation5] sm:$0xff] %v45_v22 }
  0x22   :  { %48 = vst [vmem:[#allocation5 + $0x8] sm:$0xff] %v46_v23 }
  0x23   :  { %59 = dma.vmem_to_hbm [thread:$0]  %s55_s11, 256, %s57_s14, [#allocation4]  }
  0x24   :  { %122 = dma.done.wait [#allocation4], 256  }
  0x25   :  { %123 = vsyncadd [#allocation4], 4294967040 }
  0x26   :  { %64 = vsyncpa [#allocation3], 1 }
  0x27   :  { %65 = vsyncpa [#allocation4], 1 }

</bundles_post_ra>
